<compile_context>
chip_gen: v7x
topology: tpu7x:2x2x1
jax: 0.10.0
libtpu: 0.0.40
codegen_flags: <defaults>
</compile_context>

<pallas_src>
import functools
import math

import jax
import jax.numpy as jnp
from jax.experimental import pallas as pl
from jax.experimental.pallas import tpu as pltpu

EPS = 1e-5  # nn.BatchNorm1d default


def _round_up(a, b):
    return (a + b - 1) // b * b


def _vmem_limit_bytes():
    """Per-generation scoped-VMEM budget (v7x has only 64 MiB physical)."""
    cap = 64 * 1024 * 1024
    try:
        info = pltpu.get_tpu_info()
        cap = int(getattr(info, "vmem_capacity_bytes", cap) or cap)
    except Exception:
        pass
    # <= ~half of physical (keeps double-buffering alive on v7x), >= v5e's
    # 16 MiB default, capped at 100 MiB on the 128 MiB parts.
    return int(max(16 * 1024 * 1024, min(cap // 2, 100 * 1024 * 1024)))


def _conv_tile(x_ref, w_ref, *, c_in, k, tile_l, prefolded):
    """Single MXU matmul: (C_out, K*C_in) @ (K*C_in, tile_l) -> f32 tile."""
    if prefolded:
        xs = x_ref[0]                                    # (K*C_in, tile_l)
    elif k == 1:
        xs = x_ref[0, :, 0:tile_l]
    else:
        # In-kernel im2col: K statically lane-shifted slices stacked along
        # sublanes (input stays 1x in HBM; no wrapper-side patch blowup).
        xs = jnp.concatenate(
            [x_ref[0, :, kk:kk + tile_l] for kk in range(k)], axis=0)
    return jnp.dot(w_ref[...], xs, preferred_element_type=jnp.float32)


def _make_stats_kernel(*, c_in, k, l_out, tile_l, prefolded):
    def kernel(x_ref, w_ref, o_ref):
        acc = _conv_tile(x_ref, w_ref, c_in=c_in, k=k, tile_l=tile_l,
                         prefolded=prefolded)
        if l_out % tile_l != 0:  # mask lane padding (static Python check)
            lane = jax.lax.broadcasted_iota(jnp.int32, (1, tile_l), 1)
            yv = acc * (lane < l_out).astype(jnp.float32)
        else:
            yv = acc
        s = jnp.sum(yv, axis=1, keepdims=True)           # (C_out, 1)
        q = jnp.sum(yv * acc, axis=1, keepdims=True)     # (C_out, 1) = sum y^2
        o_ref[0] = jnp.concatenate([s, q], axis=1)       # (C_out, 2)
    return kernel


def _make_norm_kernel(*, c_in, k, tile_l, prefolded):
    def kernel(x_ref, w_ref, scale_ref, shift_ref, o_ref):
        acc = _conv_tile(x_ref, w_ref, c_in=c_in, k=k, tile_l=tile_l,
                         prefolded=prefolded)
        y = acc * scale_ref[...] + shift_ref[...]        # folded BN: 2 VPU ops/elt
        o_ref[0] = jnp.maximum(y, 0.0).astype(o_ref.dtype)
    return kernel


def conbr_block_forward(x, weight, bias, gamma, beta, *, stride, padding=3,
                        compute_dtype=jnp.float32):
    """Conv1d(pad=3, bias) + BatchNorm1d(training stats) + ReLU.

    x: (N, C_in, L) f32; weight: (C_out, C_in, K); bias/gamma/beta: (C_out,).
    """
    del bias  # exactly cancelled by training-mode BN mean subtraction
    # TODO(synk): eval-mode BN (running stats) would need the conv bias back.
    n, c_in, length = x.shape
    c_out, _, k = weight.shape
    s = int(stride)
    l_out = (length + 2 * padding - k) // s + 1

    # Lane-dense output width; single tile per batch (no L-tile grid axis).
    l_out_pad = _round_up(l_out, 128)
    tile_l = l_out_pad

    # Zero-padded input long enough for every tap of every (padded) output col.
    total_needed = (l_out_pad - 1) * s + k
    right = max(0, total_needed - length - padding)
    x_pad = jnp.pad(x, ((0, 0), (0, 0), (padding, right)))[:, :, :total_needed]

    if s == 1:
        # Padded input stays 1x in HBM; the K tap shifts happen in-kernel.
        x_op = x_pad
        rows = c_in
        prefolded = False
    else:
        # TODO(synk): stride > 1 materializes a wrapper-side K*C_in im2col; an
        # in-kernel strided-sublane load would avoid the K-fold HBM blowup but
        # its Mosaic lowering is unverified.
        slices = [jax.lax.slice_in_dim(x_pad, kk, kk + (l_out_pad - 1) * s + 1,
                                       stride=s, axis=2) for kk in range(k)]
        x_op = jnp.stack(slices, axis=1).reshape(n, k * c_in, l_out_pad)
        rows = k * c_in
        prefolded = True

    x_op = x_op.astype(compute_dtype)
    cols = x_op.shape[2]

    # Fold the weight to (C_out, K*C_in) with index kk*C_in + c, matching the
    # in-kernel stacking order.
    w_fold = jnp.transpose(weight, (0, 2, 1)).reshape(c_out, k * c_in)
    w_fold = w_fold.astype(compute_dtype)

    vmem_limit = _vmem_limit_bytes()
    itemsize = jnp.dtype(compute_dtype).itemsize
    resident = (2 * (rows * cols * itemsize + c_out * tile_l * 4)
                + c_out * k * c_in * itemsize)
    if resident > vmem_limit:
        # TODO(synk): halo-tiled L path (overlapping x windows) for sequences
        # too long to keep a full padded row VMEM-resident per batch.
        raise NotImplementedError("sequence too long for full-row residency")

    compiler_params = pltpu.CompilerParams(
        dimension_semantics=("parallel",),   # batch axis -> both TCs on v7x
        vmem_limit_bytes=vmem_limit,
    )

    # ---- call 1: per-batch partial BN statistics (sum, sum of squares) ----
    stats_kernel = _make_stats_kernel(c_in=c_in, k=k, l_out=l_out,
                                      tile_l=tile_l, prefolded=prefolded)
    partials = pl.pallas_call(
        stats_kernel,
        out_shape=jax.ShapeDtypeStruct((n, c_out, 2), jnp.float32),
        grid_spec=pltpu.PrefetchScalarGridSpec(
            num_scalar_prefetch=0,
            grid=(n,),
            in_specs=[
                pl.BlockSpec((1, rows, cols), lambda b: (b, 0, 0)),
                pl.BlockSpec((c_out, k * c_in), lambda b: (0, 0)),
            ],
            out_specs=pl.BlockSpec((1, c_out, 2), lambda b: (b, 0, 0)),
        ),
        compiler_params=compiler_params,
    )(x_op, w_fold)

    # ---- fold BN stats into per-channel scale/shift (computed once) ----
    totals = jnp.sum(partials, axis=0)                          # (C_out, 2)
    inv_count = 1.0 / float(n * l_out)
    mean = totals[:, 0] * inv_count
    var = jnp.maximum(totals[:, 1] * inv_count - mean * mean, 0.0)  # clamp
    scale = gamma.astype(jnp.float32) * jax.lax.rsqrt(var + EPS)
    shift = beta.astype(jnp.float32) - mean * scale
    scale2d = scale.reshape(c_out, 1)
    shift2d = shift.reshape(c_out, 1)

    # ---- call 2: conv recompute + folded BN + ReLU, lane-dense output ----
    norm_kernel = _make_norm_kernel(c_in=c_in, k=k, tile_l=tile_l,
                                    prefolded=prefolded)
    out_pad = pl.pallas_call(
        norm_kernel,
        out_shape=jax.ShapeDtypeStruct((n, c_out, l_out_pad), jnp.float32),
        grid_spec=pltpu.PrefetchScalarGridSpec(
            num_scalar_prefetch=0,
            grid=(n,),
            in_specs=[
                pl.BlockSpec((1, rows, cols), lambda b: (b, 0, 0)),
                pl.BlockSpec((c_out, k * c_in), lambda b: (0, 0)),
                pl.BlockSpec((c_out, 1), lambda b: (0, 0)),
                pl.BlockSpec((c_out, 1), lambda b: (0, 0)),
            ],
            out_specs=pl.BlockSpec((1, c_out, tile_l), lambda b: (b, 0, 0)),
        ),
        compiler_params=compiler_params,
    )(x_op, w_fold, scale2d, shift2d)

    # Trim lane padding; output is already in PyTorch (N, C_out, L_out) layout.
    return out_pad[:, :, :l_out]


def reference_forward(x, weight, bias, gamma, beta, *, stride, padding=3):
    """Pure-JAX reference matching PyTorch Conv1d + BatchNorm1d(train) + ReLU."""
    y = jax.lax.conv_general_dilated(
        x, weight, window_strides=(stride,), padding=[(padding, padding)],
        dimension_numbers=("NCH", "OIH", "NCH"),
    )
    y = y + bias[None, :, None]
    mean = y.mean(axis=(0, 2), keepdims=True)
    var = ((y - mean) ** 2).mean(axis=(0, 2), keepdims=True)
    y = (y - mean) / jnp.sqrt(var + EPS)
    y = y * gamma[None, :, None] + beta[None, :, None]
    return jnp.maximum(y, 0.0)


if __name__ == "__main__":
    # Shapes consistent with conbr_block(in_channels=4, out_channels=8,
    # kernel_size=7, stride=1) applied to x of shape (N=2, C_in=4, L=16).
    N, C_IN, L = 2, 4, 16
    C_OUT, K, STRIDE = 8, 7, 1

    key = jax.random.PRNGKey(0)
    kx, kw, kb = jax.random.split(key, 3)

    x = jax.random.normal(kx, (N, C_IN, L), dtype=jnp.float32)
    bound = 1.0 / math.sqrt(C_IN * K)
    weight = jax.random.uniform(kw, (C_OUT, C_IN, K), jnp.float32, -bound, bound)
    bias = jax.random.uniform(kb, (C_OUT,), jnp.float32, -bound, bound)
    gamma = jnp.ones((C_OUT,), jnp.float32)   # BatchNorm1d default init
    beta = jnp.zeros((C_OUT,), jnp.float32)

    l_out = (L + 2 * 3 - K) // STRIDE + 1
    ref = reference_forward(x, weight, bias, gamma, beta, stride=STRIDE)

    # f32 MXU operands: tight comparison against the pure-JAX reference.
    fwd_f32 = jax.jit(functools.partial(conbr_block_forward, stride=STRIDE,
                                        compute_dtype=jnp.float32))
    out_f32 = jax.block_until_ready(fwd_f32(x, weight, bias, gamma, beta))
    assert out_f32.shape == (N, C_OUT, l_out), out_f32.shape
    assert jnp.allclose(out_f32, ref, atol=1e-4, rtol=1e-4), "f32 mismatch"

    # bf16 MXU operands (v6e/v7x bandwidth / VMEM configuration): looser tol.
    fwd_bf16 = jax.jit(functools.partial(conbr_block_forward, stride=STRIDE,
                                         compute_dtype=jnp.bfloat16))
    out_bf16 = jax.block_until_ready(fwd_bf16(x, weight, bias, gamma, beta))
    assert out_bf16.shape == (N, C_OUT, l_out), out_bf16.shape
    assert jnp.allclose(out_bf16, ref, atol=2e-2, rtol=2e-2), "bf16 mismatch"

    print("KERNEL_OK")
</pallas_src>

<mosaic_0001>
module attributes {stable_mosaic.version = 11 : i64} {
  func.func @kernel(%arg0: i32, %arg1: memref<1x4x134xf32, #tpu.memory_space<vmem>>, %arg2: memref<8x28xf32, #tpu.memory_space<vmem>>, %arg3: memref<1x8x2xf32, #tpu.memory_space<vmem>>) attributes {dimension_semantics = [#tpu.dimension_semantics<parallel>], iteration_bounds = array<i64: 2>, scalar_prefetch = 0 : i64, scratch_operands = 0 : i64, tpu.core_type = #tpu.core_type<tc>, window_params = [{transform_indices = @transform_0, window_bounds = array<i64: 1, 4, 134>}, {pipeline_mode = #tpu.pipeline_mode<synchronous>, transform_indices = @transform_1, window_bounds = array<i64: 8, 28>}, {transform_indices = @transform_2, window_bounds = array<i64: 1, 8, 2>}]} {
    %c0 = arith.constant 0 : index
    %c0_0 = arith.constant 0 : index
    %c0_1 = arith.constant 0 : index
    %0 = vector.load %arg1[%c0, %c0_0, %c0_1] : memref<1x4x134xf32, #tpu.memory_space<vmem>>, vector<1x4x128xf32>
    %1 = vector.shape_cast %0 : vector<1x4x128xf32> to vector<4x128xf32>
    %c0_2 = arith.constant 0 : index
    %c0_3 = arith.constant 0 : index
    %c1 = arith.constant 1 : index
    %2 = vector.load %arg1[%c0_2, %c0_3, %c1] : memref<1x4x134xf32, #tpu.memory_space<vmem>>, vector<1x4x128xf32>
    %3 = vector.shape_cast %2 : vector<1x4x128xf32> to vector<4x128xf32>
    %c0_4 = arith.constant 0 : index
    %c0_5 = arith.constant 0 : index
    %c2 = arith.constant 2 : index
    %4 = vector.load %arg1[%c0_4, %c0_5, %c2] : memref<1x4x134xf32, #tpu.memory_space<vmem>>, vector<1x4x128xf32>
    %5 = vector.shape_cast %4 : vector<1x4x128xf32> to vector<4x128xf32>
    %c0_6 = arith.constant 0 : index
    %c0_7 = arith.constant 0 : index
    %c3 = arith.constant 3 : index
    %6 = vector.load %arg1[%c0_6, %c0_7, %c3] : memref<1x4x134xf32, #tpu.memory_space<vmem>>, vector<1x4x128xf32>
    %7 = vector.shape_cast %6 : vector<1x4x128xf32> to vector<4x128xf32>
    %c0_8 = arith.constant 0 : index
    %c0_9 = arith.constant 0 : index
    %c4 = arith.constant 4 : index
    %8 = vector.load %arg1[%c0_8, %c0_9, %c4] : memref<1x4x134xf32, #tpu.memory_space<vmem>>, vector<1x4x128xf32>
    %9 = vector.shape_cast %8 : vector<1x4x128xf32> to vector<4x128xf32>
    %c0_10 = arith.constant 0 : index
    %c0_11 = arith.constant 0 : index
    %c5 = arith.constant 5 : index
    %10 = vector.load %arg1[%c0_10, %c0_11, %c5] : memref<1x4x134xf32, #tpu.memory_space<vmem>>, vector<1x4x128xf32>
    %11 = vector.shape_cast %10 : vector<1x4x128xf32> to vector<4x128xf32>
    %c0_12 = arith.constant 0 : index
    %c0_13 = arith.constant 0 : index
    %c6 = arith.constant 6 : index
    %12 = vector.load %arg1[%c0_12, %c0_13, %c6] : memref<1x4x134xf32, #tpu.memory_space<vmem>>, vector<1x4x128xf32>
    %13 = vector.shape_cast %12 : vector<1x4x128xf32> to vector<4x128xf32>
    %14 = tpu.concatenate %1, %3, %5, %7, %9, %11, %13 in 0 : vector<4x128xf32>, vector<4x128xf32>, vector<4x128xf32>, vector<4x128xf32>, vector<4x128xf32>, vector<4x128xf32>, vector<4x128xf32> -> vector<28x128xf32>
    %c0_14 = arith.constant 0 : index
    %c0_15 = arith.constant 0 : index
    %15 = vector.load %arg2[%c0_14, %c0_15] : memref<8x28xf32, #tpu.memory_space<vmem>>, vector<8x28xf32>
    %cst = arith.constant dense<0.000000e+00> : vector<8x128xf32>
    %16 = tpu.matmul %15, %14, %cst {dimension_numbers = #tpu.dot_dimension_numbers<[1], [0], [0], [1], [0, 0, 1, 1], [], []>} : vector<8x28xf32>, vector<28x128xf32>, vector<8x128xf32> -> vector<8x128xf32>
    %17 = tpu.iota {dimensions = array<i32: 1>} : vector<1x128xi32>
    %c16_i32 = arith.constant 16 : i32
    %18 = vector.broadcast %c16_i32 : i32 to vector<1x128xi32>
    %19 = arith.cmpi slt, %17, %18 : vector<1x128xi32>
    %20 = arith.extui %19 : vector<1x128xi1> to vector<1x128xi32>
    %21 = arith.sitofp %20 : vector<1x128xi32> to vector<1x128xf32>
    %22 = vector.broadcast %21 : vector<1x128xf32> to vector<8x128xf32>
    %23 = arith.mulf %16, %22 : vector<8x128xf32>
    %cst_16 = arith.constant dense<0.000000e+00> : vector<8xf32>
    %24 = vector.multi_reduction <add>, %23, %cst_16 [1] : vector<8x128xf32> to vector<8xf32>
    %25 = vector.shape_cast %24 : vector<8xf32> to vector<8x1xf32>
    %26 = arith.mulf %23, %16 : vector<8x128xf32>
    %cst_17 = arith.constant dense<0.000000e+00> : vector<8xf32>
    %27 = vector.multi_reduction <add>, %26, %cst_17 [1] : vector<8x128xf32> to vector<8xf32>
    %28 = vector.shape_cast %27 : vector<8xf32> to vector<8x1xf32>
    %29 = tpu.concatenate %25, %28 in 1 : vector<8x1xf32>, vector<8x1xf32> -> vector<8x2xf32>
    %c0_18 = arith.constant 0 : index
    %c0_19 = arith.constant 0 : index
    %c0_20 = arith.constant 0 : index
    %30 = vector.load %arg3[%c0_18, %c0_19, %c0_20] : memref<1x8x2xf32, #tpu.memory_space<vmem>>, vector<1x8x2xf32>
    %31 = vector.shape_cast %30 : vector<1x8x2xf32> to vector<8x2xf32>
    %32 = vector.shape_cast %29 : vector<8x2xf32> to vector<1x8x2xf32>
    tpu.vector_store %arg3[%c0_18, %c0_19, %c0_20], %32 {strides = array<i32>} : memref<1x8x2xf32, #tpu.memory_space<vmem>>, vector<1x8x2xf32>,
    return
  }
  func.func @transform_0(%arg0: i32) -> (i32, i32, i32) {
    %c0_i32 = arith.constant 0 : i32
    %c0_i32_0 = arith.constant 0 : i32
    %c0_i32_1 = arith.constant 0 : i32
    return %arg0, %c0_i32, %c0_i32_0 : i32, i32, i32
  }
  func.func @transform_1(%arg0: i32) -> (i32, i32) {
    %c0_i32 = arith.constant 0 : i32
    %c0_i32_0 = arith.constant 0 : i32
    %c0_i32_1 = arith.constant 0 : i32
    return %c0_i32, %c0_i32_0 : i32, i32
  }
  func.func @transform_2(%arg0: i32) -> (i32, i32, i32) {
    %c0_i32 = arith.constant 0 : i32
    %c0_i32_0 = arith.constant 0 : i32
    %c0_i32_1 = arith.constant 0 : i32
    return %arg0, %c0_i32, %c0_i32_0 : i32, i32, i32
  }
}

module attributes {stable_mosaic.version = 11 : i64} {
  func.func @kernel(%arg0: i32, %arg1: memref<1x4x134xf32, #tpu.memory_space<vmem>>, %arg2: memref<8x28xf32, #tpu.memory_space<vmem>>, %arg3: memref<8x1xf32, #tpu.memory_space<vmem>>, %arg4: memref<8x1xf32, #tpu.memory_space<vmem>>, %arg5: memref<1x8x128xf32, #tpu.memory_space<vmem>>) attributes {dimension_semantics = [#tpu.dimension_semantics<parallel>], iteration_bounds = array<i64: 2>, scalar_prefetch = 0 : i64, scratch_operands = 0 : i64, tpu.core_type = #tpu.core_type<tc>, window_params = [{transform_indices = @transform_0, window_bounds = array<i64: 1, 4, 134>}, {pipeline_mode = #tpu.pipeline_mode<synchronous>, transform_indices = @transform_1, window_bounds = array<i64: 8, 28>}, {pipeline_mode = #tpu.pipeline_mode<synchronous>, transform_indices = @transform_2, window_bounds = array<i64: 8, 1>}, {pipeline_mode = #tpu.pipeline_mode<synchronous>, transform_indices = @transform_3, window_bounds = array<i64: 8, 1>}, {transform_indices = @transform_4, window_bounds = array<i64: 1, 8, 128>}]} {
    %c0 = arith.constant 0 : index
    %c0_0 = arith.constant 0 : index
    %c0_1 = arith.constant 0 : index
    %0 = vector.load %arg1[%c0, %c0_0, %c0_1] : memref<1x4x134xf32, #tpu.memory_space<vmem>>, vector<1x4x128xf32>
    %1 = vector.shape_cast %0 : vector<1x4x128xf32> to vector<4x128xf32>
    %c0_2 = arith.constant 0 : index
    %c0_3 = arith.constant 0 : index
    %c1 = arith.constant 1 : index
    %2 = vector.load %arg1[%c0_2, %c0_3, %c1] : memref<1x4x134xf32, #tpu.memory_space<vmem>>, vector<1x4x128xf32>
    %3 = vector.shape_cast %2 : vector<1x4x128xf32> to vector<4x128xf32>
    %c0_4 = arith.constant 0 : index
    %c0_5 = arith.constant 0 : index
    %c2 = arith.constant 2 : index
    %4 = vector.load %arg1[%c0_4, %c0_5, %c2] : memref<1x4x134xf32, #tpu.memory_space<vmem>>, vector<1x4x128xf32>
    %5 = vector.shape_cast %4 : vector<1x4x128xf32> to vector<4x128xf32>
    %c0_6 = arith.constant 0 : index
    %c0_7 = arith.constant 0 : index
    %c3 = arith.constant 3 : index
    %6 = vector.load %arg1[%c0_6, %c0_7, %c3] : memref<1x4x134xf32, #tpu.memory_space<vmem>>, vector<1x4x128xf32>
    %7 = vector.shape_cast %6 : vector<1x4x128xf32> to vector<4x128xf32>
    %c0_8 = arith.constant 0 : index
    %c0_9 = arith.constant 0 : index
    %c4 = arith.constant 4 : index
    %8 = vector.load %arg1[%c0_8, %c0_9, %c4] : memref<1x4x134xf32, #tpu.memory_space<vmem>>, vector<1x4x128xf32>
    %9 = vector.shape_cast %8 : vector<1x4x128xf32> to vector<4x128xf32>
    %c0_10 = arith.constant 0 : index
    %c0_11 = arith.constant 0 : index
    %c5 = arith.constant 5 : index
    %10 = vector.load %arg1[%c0_10, %c0_11, %c5] : memref<1x4x134xf32, #tpu.memory_space<vmem>>, vector<1x4x128xf32>
    %11 = vector.shape_cast %10 : vector<1x4x128xf32> to vector<4x128xf32>
    %c0_12 = arith.constant 0 : index
    %c0_13 = arith.constant 0 : index
    %c6 = arith.constant 6 : index
    %12 = vector.load %arg1[%c0_12, %c0_13, %c6] : memref<1x4x134xf32, #tpu.memory_space<vmem>>, vector<1x4x128xf32>
    %13 = vector.shape_cast %12 : vector<1x4x128xf32> to vector<4x128xf32>
    %14 = tpu.concatenate %1, %3, %5, %7, %9, %11, %13 in 0 : vector<4x128xf32>, vector<4x128xf32>, vector<4x128xf32>, vector<4x128xf32>, vector<4x128xf32>, vector<4x128xf32>, vector<4x128xf32> -> vector<28x128xf32>
    %c0_14 = arith.constant 0 : index
    %c0_15 = arith.constant 0 : index
    %15 = vector.load %arg2[%c0_14, %c0_15] : memref<8x28xf32, #tpu.memory_space<vmem>>, vector<8x28xf32>
    %cst = arith.constant dense<0.000000e+00> : vector<8x128xf32>
    %16 = tpu.matmul %15, %14, %cst {dimension_numbers = #tpu.dot_dimension_numbers<[1], [0], [0], [1], [0, 0, 1, 1], [], []>} : vector<8x28xf32>, vector<28x128xf32>, vector<8x128xf32> -> vector<8x128xf32>
    %c0_16 = arith.constant 0 : index
    %c0_17 = arith.constant 0 : index
    %17 = vector.load %arg3[%c0_16, %c0_17] : memref<8x1xf32, #tpu.memory_space<vmem>>, vector<8x1xf32>
    %18 = vector.broadcast %17 : vector<8x1xf32> to vector<8x128xf32>
    %19 = arith.mulf %16, %18 : vector<8x128xf32>
    %c0_18 = arith.constant 0 : index
    %c0_19 = arith.constant 0 : index
    %20 = vector.load %arg4[%c0_18, %c0_19] : memref<8x1xf32, #tpu.memory_space<vmem>>, vector<8x1xf32>
    %21 = vector.broadcast %20 : vector<8x1xf32> to vector<8x128xf32>
    %22 = arith.addf %19, %21 : vector<8x128xf32>
    %cst_20 = arith.constant 0.000000e+00 : f32
    %23 = vector.broadcast %cst_20 : f32 to vector<8x128xf32>
    %24 = arith.maximumf %22, %23 : vector<8x128xf32>
    %c0_21 = arith.constant 0 : index
    %c0_22 = arith.constant 0 : index
    %c0_23 = arith.constant 0 : index
    %25 = vector.load %arg5[%c0_21, %c0_22, %c0_23] : memref<1x8x128xf32, #tpu.memory_space<vmem>>, vector<1x8x128xf32>
    %26 = vector.shape_cast %25 : vector<1x8x128xf32> to vector<8x128xf32>
    %27 = vector.shape_cast %24 : vector<8x128xf32> to vector<1x8x128xf32>
    tpu.vector_store %arg5[%c0_21, %c0_22, %c0_23], %27 {strides = array<i32>} : memref<1x8x128xf32, #tpu.memory_space<vmem>>, vector<1x8x128xf32>,
    return
  }
  func.func @transform_0(%arg0: i32) -> (i32, i32, i32) {
    %c0_i32 = arith.constant 0 : i32
    %c0_i32_0 = arith.constant 0 : i32
    %c0_i32_1 = arith.constant 0 : i32
    return %arg0, %c0_i32, %c0_i32_0 : i32, i32, i32
  }
  func.func @transform_1(%arg0: i32) -> (i32, i32) {
    %c0_i32 = arith.constant 0 : i32
    %c0_i32_0 = arith.constant 0 : i32
    %c0_i32_1 = arith.constant 0 : i32
    return %c0_i32, %c0_i32_0 : i32, i32
  }
  func.func @transform_2(%arg0: i32) -> (i32, i32) {
    %c0_i32 = arith.constant 0 : i32
    %c0_i32_0 = arith.constant 0 : i32
    %c0_i32_1 = arith.constant 0 : i32
    return %c0_i32, %c0_i32_0 : i32, i32
  }
  func.func @transform_3(%arg0: i32) -> (i32, i32) {
    %c0_i32 = arith.constant 0 : i32
    %c0_i32_0 = arith.constant 0 : i32
    %c0_i32_1 = arith.constant 0 : i32
    return %c0_i32, %c0_i32_0 : i32, i32
  }
  func.func @transform_4(%arg0: i32) -> (i32, i32, i32) {
    %c0_i32 = arith.constant 0 : i32
    %c0_i32_0 = arith.constant 0 : i32
    %c0_i32_1 = arith.constant 0 : i32
    return %arg0, %c0_i32, %c0_i32_0 : i32, i32, i32
  }
}

</mosaic_0001>

<bundles_post_ra>
// kernel: conbr_block_forward.2
= control target key start
LH: loop header
LB: loop body
LE: loop exit
PB: predicated region body
PF: predicated region fallthrough
CT: control target
= control target key end

     0   :  { %s457_s9 = smov 0   ;;  %s493_s0 = inlined_call_operand.vmem [shape: f32[2,4,134], index: 0, kind: input, shape index: {}]   ;;  %s494_s1 = inlined_call_operand.vmem [shape: f32[8,28], index: 1, kind: input, shape index: {}]   ;;  %s495_s2 = inlined_call_operand.vmem [shape: f32[2,8,2], index: 2, kind: output, shape index: {}]  }
   0x1 LB: > { %s337_s10 = sadd.s32 4294967295, %s430_s9   ;;  %p341_p0 = scmp.ge.s32.totalorder %s430_s9, 1  ;;  %s430_s9 = sphi %s457_s9, %s12_s9  }
   0x2   : > { %p112_p1 = scmp.lt.s32.totalorder %s430_s9, 3 }
   0x4   : > { %p113_p2 = pnand %p341_p0, %p112_p1 }
   0x5   : > { %p133_p3 = scmp.lt.s32.totalorder (!%p113_p2), %s337_s10, 1  ;;  %v432_v3 = vmov (!%p113_p2), 0.0|0.0   ;;  %s433_s15 = smov (!%p113_p2), 127   ;;  %vm435_vm0 = vmmov (!%p113_p2), 0   ;;  %v436_v6 = vmov (!%p113_p2), 0.0   ;;  %vm150_vm1 = vcmask (!%p113_p2), 1039360  }
   0x6   : > { %116 = sbr.rel (%p113_p2) target bundleno = 514 (0x202), region = 28  ;;  %367 = vmatprep.subr.bf16.mxu0 (!%p113_p2), %v432_v3  ;;  %s434_s16 = smov (!%p113_p2), 125   ;;  %364 = vmatprep.mubr.msk.f32.mxu0 (!%p113_p2), %vm435_vm0, %v436_v6  ;;  %vm158_vm2 = vcmask (!%p113_p2), 1031168   ;;  %vm165_vm3 = vcmask (!%p113_p2), 1022976   ;;  %vm188_vm4 = vcmask (!%p113_p2), 1043456   ;;  %vm172_vm5 = vcmask (!%p113_p2), 1014784  }
   0x7   : > { %s437_s17 = smov (!%p113_p2), 126   ;;  %s438_s18 = smov (!%p113_p2), 124   ;;  %vm179_vm6 = vcmask (!%p113_p2), 1006592   ;;  %vm186_vm7 = vcmask (!%p113_p2), 998400   ;;  %vm441_vm8 = vmmov (!%p113_p2), 1   ;;  %v192_v37 = vld [vmem:[%s494_s1] sm:$0xff] (!%p113_p2)  ;;  %v269_v38 = vlaneseq (!%p113_p2) }
   0x8   : > { %s439_s19 = smov (!%p113_p2), 123   ;;  %s440_s20 = smov (!%p113_p2), 122   ;;  %vm372_vm9 = vmpackc.low (!%p113_p2), %vm188_vm4, %vm441_vm8  ;;  %vm193_vm10 = vcmask (!%p113_p2), 228352   ;;  %vm280_vm12 = vcmask (!%p113_p2), 7168   ;;  %vm282_vm13 = vcmask (!%p113_p2), 15360  }
   0x9   : > { %v270_v39 = vand.u32 (!%p113_p2), 127, %v269_v38 }
   0xb   : > { %vm271_vm11 = vcmp.lt.s32.totalorder (!%p113_p2), %v270_v39, 16 }
   0xc   : > { %v347_v40 = vsel (!%p113_p2), %vm271_vm11, 1.0, %v436_v6 }
   0xd   : > { %s497_s10 = smov (!%p133_p3, %s337_s10), 1 }
   0xe   : > { %s350_s11 = sshll.u32 %s497_s10, 3 }
   0xf   : > { %s473_s14 = scalar_lea.vmem %s493_s0, %s350_s11  ;;  %s141_s25 = scalar_lea.vmem %s495_s2, %s350_s11 }
  0x10   : > { %v143_v0 = vld [vmem:[%s473_s14] sm:$0xff] }
  0x11   : > { %v145_v1 = vcombine.low %v143_v0, %v143_v0  ;;  %v153_v2 = vcombine.high %v143_v0, %v143_v0  ;;  %v142_v17 = vld [vmem:[%s473_s14] sm:$0xf] }
  0x13   : > { %v392_v4 = vpack.i.bf16 %v143_v0, %v145_v1  ;;  %v397_v5 = vpack.i.bf16 %v153_v2, %v143_v0 }
  0x15   : > { %393 = vrot.lane.b32.xlu0 %v392_v4, %s433_s15  ;;  %403 = vrot.lane.b32.xlu1 %v392_v4, %s434_s16 }
  0x19   : > { %398 = vrot.lane.b32.xlu0 %v397_v5, %s437_s17  ;;  %408 = vrot.lane.b32.xlu1 %v397_v5, %s438_s18 }
  0x1d   : > { %413 = vrot.lane.b32.xlu0 %v392_v4, %s439_s19  ;;  %418 = vrot.lane.b32.xlu1 %v397_v5, %s440_s20 }
  0x87   : > { %v394_v7 = vpop.permute.xlu0 %393  ;;  %v404_v8 = vpop.permute.xlu1 %403 }
  0x88   : > { %v396_v9 = vunpack.i.h.bf16 %v394_v7  ;;  %v395_v10 = vunpack.i.l.bf16 %v394_v7  ;;  %v406_v11 = vunpack.i.h.bf16 %v404_v8  ;;  %v405_v12 = vunpack.i.l.bf16 %v404_v8 }
  0x8a   : > { %v151_v18 = vsel %vm150_vm1, %v395_v10, %v396_v9  ;;  %v166_v22 = vsel %vm165_vm3, %v405_v12, %v406_v11 }
  0x8b   : > { %v399_v13 = vpop.permute.xlu0 %398  ;;  %v409_v14 = vpop.permute.xlu1 %408  ;;  %v189_v25 = vsel %vm188_vm4, %v142_v17, %v151_v18 }
  0x8c   : > { %v401_v15 = vunpack.i.h.bf16 %v399_v13  ;;  %v400_v16 = vunpack.i.l.bf16 %v399_v13  ;;  %v411_v19 = vunpack.i.h.bf16 %v409_v14  ;;  %v410_v20 = vunpack.i.l.bf16 %v409_v14 }
  0x8e   : > { %v159_v21 = vsel %vm158_vm2, %v400_v16, %v401_v15  ;;  %v173_v32 = vsel %vm172_vm5, %v410_v20, %v411_v19 }
  0x8f   : > { %v414_v23 = vpop.permute.xlu0 %413  ;;  %v419_v24 = vpop.permute.xlu1 %418  ;;  %v190_v26 = vsel %vm188_vm4, %v159_v21, %v166_v22 }
  0x90   : > { %v416_v27 = vunpack.i.h.bf16 %v414_v23  ;;  %v415_v28 = vunpack.i.l.bf16 %v414_v23  ;;  %v421_v29 = vunpack.i.h.bf16 %v419_v24  ;;  %v420_v30 = vunpack.i.l.bf16 %v419_v24 }
  0x91   : > { %v368_v31 = vpack.c.bf16 %v190_v26, %v189_v25 }
  0x92   : > { %v180_v33 = vsel %vm179_vm6, %v415_v28, %v416_v27  ;;  %v187_v34 = vsel %vm186_vm7, %v420_v30, %v421_v29 }
  0x93   : > { %369 = vmatpush3.bf16.msra.mxu0 %v368_v31  ;;  %v191_v35 = vsel %vm188_vm4, %v173_v32, %v180_v33 }
  0x94   : > { %370 = vmatprep.subr.bf16.mxu0 %v432_v3  ;;  %v371_v36 = vpack.c.bf16 %v187_v34, %v191_v35 }
  0x97   : > { %373 = vmatpush3.bf16.msk.msra.mxu0 %vm372_vm9, %v371_v36 }
  0x9a   : > { %365 = vmatmul.mubr.msk.f32.vlgmr.msra.gmra.mrb[0].mxu0 %vm193_vm10, %v192_v37 }
 0x16d   : > { %v265_v41 = vpop.f32.mrb[0].mxu0 }
 0x16e   : > { %v366_v42 = vpop.f32.mrb[1].mxu0  ;;  %v274_v43 = vmul.f32 %v347_v40, %v265_v41 }
 0x170   : > { %275 = vadd.xlane.f32.xlu0 %v274_v43  ;;  %v277_v44 = vmul.f32 %v274_v43, %v265_v41 }
 0x172   : > { %278 = vadd.xlane.f32.xlu1 %v277_v44 }
 0x1fd   : > { %v276_v45 = vpop.xlane.xlu0 %275 }
 0x1ff   : > { %v279_v46 = vpop.xlane.xlu1 %278 }
 0x200   : > { %v281_v47 = vsel %vm280_vm12, %v276_v45, %v279_v46 }
 0x201   : > { %283 = vst.msk [vmem:[%s141_s25] sm:$0xff] %vm282_vm13, %v281_v47 }
 0x202 PF: > { %s12_s9 = sadd.s32 1, %s430_s9  }
 0x203   : > { %p9_p4 = scmp.ge.s32.totalorder %s12_s9, 4  }
 0x205   :  { %11 = sbr.rel (!%p9_p4) target bundleno = 1 (0x1), region = 58 }

// kernel: conbr_block_forward.3
= control target key start
LH: loop header
LB: loop body
LE: loop exit
PB: predicated region body
PF: predicated region fallthrough
CT: control target
= control target key end

     0   :  { %9 = vsyncpa [#allocation3], 0  ;;  %s754_s0 = inlined_call_operand.vmem [shape: f32[2,4,134], index: 0, kind: input, shape index: {}]   ;;  %s755_s1 = inlined_call_operand.vmem [shape: f32[8,28], index: 1, kind: input, shape index: {}]   ;;  %s756_s2 = inlined_call_operand.vmem [shape: f32[8,1], index: 2, kind: input, shape index: {}]   ;;  %s757_s3 = inlined_call_operand.vmem [shape: f32[8,1], index: 3, kind: input, shape index: {}]   ;;  %s758_s4 = inlined_call_operand.hbm [shape: f32[2,8,128], index: 4, kind: output, shape index: {}]  }
   0x1   :  { %11 = vsyncpa [#allocation3 + $0x1], 0  ;;  %s634_s15 = smov 0   ;;  %s636_s16 = smov 0  }
   0x2   :  { %s638_s17 = smov 0   ;;  %s640_s18 = smov 0  }
   0x3 LB: > { %s655_s19 = sadd.s32 4294967295, %s595_s18   ;;  %s412_s20 = sadd.s32 4294967294, %s595_s18   ;;  %s595_s18 = sphi %s640_s18, %s764_s18   ;;  %s591_s17 = sphi %s638_s17, %s763_s17   ;;  %s587_s16 = sphi %s636_s16, %s762_s16   ;;  %s583_s15 = sphi %s634_s15, %s761_s15  }
   0x4   : > { %s659_s21 = sadd.s32 1, %s595_s18   ;;  %s113_s22 = sadd.s32 1, %s591_s17 }
   0x5   : > { %s110_s23 = ssub.s32 %s595_s18, %s659_s21  ;;  %p123_p0 = scmp.ne.s32.totalorder %s591_s17, %s587_s16 }
   0x6   : > { %p111_p1 = scmp.eq.s32.totalorder %s110_s23, 0  ;;  %p124_p2 = scmp.eq.s32.totalorder %s655_s19, 1 }
   0x7   : > { %p129_p3 = scmp.ne.s32.totalorder %s587_s16, %s583_s15  ;;  %p130_p4 = scmp.eq.s32.totalorder %s412_s20, 1 }
   0x8   : > { %s670_s24 = scalar_select %p111_p1, %s591_s17, %s113_s22  }
   0x9   : > { %p672_p5 = por %p124_p2, %p123_p0  ;;  %p676_p6 = por %p130_p4, %p129_p3 }
   0xa   : > { %p415_p7 = scmp.ge.s32.totalorder %s595_s18, 1  ;;  %p165_p8 = scmp.lt.s32.totalorder %s595_s18, 3 }
   0xc   : > { %p166_p9 = pnand %p415_p7, %p165_p8 }
   0xd   : > { %p191_p10 = scmp.lt.s32.totalorder (!%p166_p9), %s655_s19, 1  ;;  %v597_v3 = vmov (!%p166_p9), 0.0|0.0   ;;  %s598_s6 = smov (!%p166_p9), 127   ;;  %vm600_vm0 = vmmov (!%p166_p9), 0   ;;  %v601_v6 = vmov (!%p166_p9), 0.0   ;;  %v604_v7 = vmov (!%p166_p9), 0  }
   0xe   : > { %169 = sbr.rel (%p166_p9) target bundleno = 395 (0x18b), region = 36  ;;  %442 = vmatprep.subr.bf16.mxu0 (!%p166_p9), %v597_v3  ;;  %s599_s7 = smov (!%p166_p9), 125   ;;  %439 = vmatprep.mubr.msk.f32.mxu0 (!%p166_p9), %vm600_vm0, %v601_v6  ;;  %v323_v8 = vld [vmem:[%s756_s2] sm:$0xff] (!%p166_p9)  ;;  %vm204_vm1 = vcmask (!%p166_p9), 1039360   ;;  %vm212_vm2 = vcmask (!%p166_p9), 1031168   ;;  %vm219_vm3 = vcmask (!%p166_p9), 1022976  }
   0xf   : > { %s602_s8 = smov (!%p166_p9), 126   ;;  %s603_s9 = smov (!%p166_p9), 124   ;;  %529 = vset.pattern.permute.xlu0 (!%p166_p9), %v604_v7  ;;  %530 = vset.pattern.permute.xlu1 (!%p166_p9), %v604_v7  ;;  %v330_v9 = vld [vmem:[%s757_s3] sm:$0xff] (!%p166_p9)  ;;  %vm242_vm4 = vcmask (!%p166_p9), 1043456   ;;  %vm226_vm5 = vcmask (!%p166_p9), 1014784   ;;  %vm233_vm6 = vcmask (!%p166_p9), 1006592  }
  0x10   : > { %s605_s10 = smov (!%p166_p9), 123   ;;  %s606_s11 = smov (!%p166_p9), 122   ;;  %vm240_vm7 = vcmask (!%p166_p9), 998400   ;;  %vm607_vm8 = vmmov (!%p166_p9), 1   ;;  %v246_v40 = vld [vmem:[%s755_s1] sm:$0xff] (!%p166_p9)  ;;  %vm247_vm10 = vcmask (!%p166_p9), 228352  }
  0x11   : > { %vm447_vm9 = vmpackc.low (!%p166_p9), %vm242_vm4, %vm607_vm8  ;;  %s422_s29 = sshll.u32 (!%p166_p9), %s655_s19, 7 }
  0x15   : > { %s192_s27 = scalar_select %p191_p10, %s655_s19, 1 }
  0x16   : > { %s608_s19 = smov [#allocation2]  }
  0x17   : > { %s425_s28 = sshll.u32 %s192_s27, 3  ;;  %s188_s27 = sand.u32 1, %s587_s16  }
  0x18   : > { %s687_s5 = scalar_lea.vmem %s754_s0, %s425_s28  ;;  %s416_s28 = sshll.u32 %s188_s27, 3 }
  0x19   : > { %v197_v0 = vld [vmem:[%s687_s5] sm:$0xff]  ;;  %s190_s30 = scalar_lea.vmem [#allocation2], %s416_s28 }
  0x1a   : > { %v199_v1 = vcombine.low %v197_v0, %v197_v0  ;;  %v207_v2 = vcombine.high %v197_v0, %v197_v0  ;;  %v196_v20 = vld [vmem:[%s687_s5] sm:$0xf]  ;;  %s353_s5 = sshll.u32 %s190_s30, 4  ;;  %s714_s5 = int_to_ptr.vmem [resolvable:$true] %s353_s5 }
  0x1c   : > { %v499_v4 = vpack.i.bf16 %v197_v0, %v199_v1  ;;  %v504_v5 = vpack.i.bf16 %v207_v2, %v197_v0 }
  0x1e   : > { %500 = vrot.lane.b32.xlu0 %v499_v4, %s598_s6  ;;  %510 = vrot.lane.b32.xlu1 %v499_v4, %s599_s7 }
  0x22   : > { %505 = vrot.lane.b32.xlu0 %v504_v5, %s602_s8  ;;  %515 = vrot.lane.b32.xlu1 %v504_v5, %s603_s9  ;;  %s712_s8 = scalar_lea.hbm %s758_s4, %s422_s29  ;;  %s340_s9 = scalar_lea.sflag [#allocation3], %s188_s27 }
  0x26   : > { %520 = vrot.lane.b32.xlu0 %v499_v4, %s605_s10  ;;  %525 = vrot.lane.b32.xlu1 %v504_v5, %s606_s11  ;;  %s533_s10 = scalar_lea.vmem %s714_s5, 128  ;;  %s537_s11 = sshll.u32 %s608_s19, 4  ;;  %s538_s11 = int_to_ptr.vmem [resolvable:$false] %s537_s11 }
  0x27   : > { %p534_p11 = scmp.ne.s32.totalorder %s714_s5, %s533_s10  ;;  %s539_s12 = scalar_lea.vmem %s538_s11, 256 }
  0x28   : > { %p540_p0 = scmp.lt.s32.totalorder %s714_s5, %s538_s11  ;;  %p541_p1 = scmp.lt.s32.totalorder %s539_s12, %s533_s10 }
  0x29   : > { %p535_p12 = pnand %p534_p11, %p672_p5 }
  0x2a   : > { %326 = vperm.xlu0 %529, %v323_v8   ;;  %333 = vperm.xlu1 %530, %v330_v9   ;;  %p542_p2 = por %p541_p1, %p540_p0 }
  0x2b   : > { %p536_p13 = pneg %p535_p12 }
  0x2d   : > { %p543_p3 = pnand %p542_p2, %p536_p13 }
  0x90   : > { %v501_v10 = vpop.permute.xlu0 %500  ;;  %v511_v11 = vpop.permute.xlu1 %510 }
  0x91   : > { %v503_v12 = vunpack.i.h.bf16 %v501_v10  ;;  %v502_v13 = vunpack.i.l.bf16 %v501_v10  ;;  %v513_v14 = vunpack.i.h.bf16 %v511_v11  ;;  %v512_v15 = vunpack.i.l.bf16 %v511_v11 }
  0x93   : > { %v205_v21 = vsel %vm204_vm1, %v502_v13, %v503_v12  ;;  %v220_v25 = vsel %vm219_vm3, %v512_v15, %v513_v14 }
  0x94   : > { %v506_v16 = vpop.permute.xlu0 %505  ;;  %v516_v17 = vpop.permute.xlu1 %515  ;;  %v243_v28 = vsel %vm242_vm4, %v196_v20, %v205_v21 }
  0x95   : > { %v508_v18 = vunpack.i.h.bf16 %v506_v16  ;;  %v507_v19 = vunpack.i.l.bf16 %v506_v16  ;;  %v518_v22 = vunpack.i.h.bf16 %v516_v17  ;;  %v517_v23 = vunpack.i.l.bf16 %v516_v17 }
  0x97   : > { %v213_v24 = vsel %vm212_vm2, %v507_v19, %v508_v18  ;;  %v227_v35 = vsel %vm226_vm5, %v517_v23, %v518_v22 }
  0x98   : > { %v521_v26 = vpop.permute.xlu0 %520  ;;  %v526_v27 = vpop.permute.xlu1 %525  ;;  %v244_v29 = vsel %vm242_vm4, %v213_v24, %v220_v25 }
  0x99   : > { %v523_v30 = vunpack.i.h.bf16 %v521_v26  ;;  %v522_v31 = vunpack.i.l.bf16 %v521_v26  ;;  %v528_v32 = vunpack.i.h.bf16 %v526_v27  ;;  %v527_v33 = vunpack.i.l.bf16 %v526_v27 }
  0x9a   : > { %v443_v34 = vpack.c.bf16 %v244_v29, %v243_v28 }
  0x9b   : > { %v234_v36 = vsel %vm233_vm6, %v522_v31, %v523_v30  ;;  %v241_v37 = vsel %vm240_vm7, %v527_v33, %v528_v32 }
  0x9c   : > { %444 = vmatpush3.bf16.msra.mxu0 %v443_v34  ;;  %v245_v38 = vsel %vm242_vm4, %v227_v35, %v234_v36 }
  0x9d   : > { %445 = vmatprep.subr.bf16.mxu0 %v597_v3  ;;  %v446_v39 = vpack.c.bf16 %v241_v37, %v245_v38 }
  0xa0   : > { %448 = vmatpush3.bf16.msk.msra.mxu0 %vm447_vm9, %v446_v39 }
  0xa3   : > { %440 = vmatmul.mubr.msk.f32.vlgmr.msra.gmra.mrb[0].mxu0 %vm247_vm10, %v246_v40 }
  0xa9   : > { %v327_v41 = vpop.permute.xlu0 %326  ;;  %v334_v43 = vpop.permute.xlu1 %333 }
 0x176   : > { %v319_v42 = vpop.f32.mrb[0].mxu0 }
 0x177   : > { %v329_v44 = vmul.f32 %v327_v41, %v319_v42  ;;  %v441_v45 = vpop.f32.mrb[1].mxu0 }
 0x179   : > { %v336_v46 = vadd.f32 %v334_v43, %v329_v44 }
 0x17b   : > { %v337_v47 = vmax.f32 %v336_v46, 0.0 }
 0x17d   : > { %338 = vst [vmem:[%s190_s30] sm:$0xff] %v337_v47 }
 0x17e   : > { %546 = shalt.err (!%p543_p3)
}
 0x17f   : > { %s547_s13 = scalar_lea.hbm %s712_s8, 128  ;;  %s551_s22 = scalar_lea.hbm %s758_s4, 256 }
 0x180   : > { %p548_p4 = scmp.ne.s32.totalorder %s712_s8, %s547_s13  ;;  %p552_p9 = scmp.lt.u32.totalorder %s712_s8, %s758_s4 }
 0x181   : > { %p553_p10 = scmp.lt.u32.totalorder %s551_s22, %s547_s13  ;;  %p555_p12 = scmp.lt.u32.totalorder %s547_s13, %s712_s8 }
 0x182   : > { %p549_p7 = pnand %p548_p4, %p672_p5 }
 0x183   : > { %p554_p11 = por %p553_p10, %p552_p9 }
 0x184   : > { %p550_p8 = pneg %p549_p7 }
 0x185   : > { %p556_p13 = por %p555_p12, %p554_p11 }
 0x187   : > { %p557_p0 = pnand %p556_p13, %p550_p8 }
 0x189   : > { %560 = shalt.err (!%p557_p0)
}
 0x18a   : > { %449 = dma.vmem_to_hbm [thread:$0]  (%p672_p5), %s714_s5, 128, %s712_s8, %s340_s9  }
 0x18b PF: > { %p455_p1 = scmp.ge.s32.totalorder %s595_s18, 2  ;;  %s365_s28 = sand.u32 1, %s583_s15  }
 0x18c   : > { %s366_s29 = scalar_lea.sflag [#allocation3], %s365_s28 }
 0x18d   : > { %p452_p2 = pnand %p455_p1, %p676_p6 }
 0x18f   : > { %578 = dma.done.wait (!%p452_p2), %s366_s29, 128  }
 0x190   : > { %580 = vsyncadd (!%p452_p2), %s366_s29, 4294967168  ;;  %p14_p3 = scmp.ge.s32.totalorder %s659_s21, 4   ;;  %s761_s15 = smov %s587_s16 }
 0x191   : > { %s762_s16 = smov %s591_s17  ;;  %s763_s17 = smov %s670_s24 }
 0x192   : > { %s764_s18 = smov %s659_s21  ;;  %16 = sbr.rel (!%p14_p3) target bundleno = 3 (0x3), region = 71 }
 0x199   :  { %371 = vsyncpa [#allocation3], 1 }
 0x19a   :  { %373 = vsyncpa [#allocation3 + $0x1], 1 }

</bundles_post_ra>
